<compile_context>
chip_gen: v7x
topology: tpu7x:2x2x1
jax: 0.10.0
libtpu: 0.0.40
codegen_flags: <defaults>
</compile_context>

<pallas_src>
import jax
import jax.numpy as jnp
from jax.experimental import pallas as pl
from jax.experimental.pallas import tpu as pltpu

F_IN = 401    # fc1 input features
HID = 128     # fc1 output / fc2 input features
F_OUT = 1     # fc2 output features


def _round_up(n, m):
    return ((n + m - 1) // m) * m


def _make_kernel(compute_dtype):
    def mlp_kernel(x_ref, w1_ref, b1_ref, w2_ref, b2_ref, o_ref):
        # x arrives as raw f32 rows; cast to the MXU dtype in VMEM (a VPU pack
        # hidden under the x DMA) instead of paying an extra HBM pad+cast pass.
        x = x_ref[...].astype(compute_dtype)
        # fc1 on the MXU, f32 accumulation.  K = 401 (full dim, unaligned) —
        # Mosaic handles the unaligned contraction dim; no HBM-side K padding.
        h = jnp.dot(x, w1_ref[...], preferred_element_type=jnp.float32)
        # bias + ReLU in f32 on the VPU (v5e-safe: no bf16 VPU there).
        h = jnp.maximum(h + b1_ref[...], 0.0)
        # fc2 (output width 1): VPU multiply + XLU row reduction instead of an
        # N=1 MXU matmul.  w2_ref is the fc2 weight laid out as a (1, HID) row.
        y = jnp.sum(h * w2_ref[...], axis=-1, keepdims=True) + b2_ref[...]
        o_ref[...] = y.astype(o_ref.dtype)

    return mlp_kernel


def _pick_tile(B):
    if B <= 1024:
        # Latency path: one tile, rounded to the f32 sublane multiple (8).
        return _round_up(B, 8)
    # Throughput path: ~2K-row tiles, multiple of 512 (=> 256 for v6e/v7x
    # MXU-M and 128 for v5e), and at least 2 tiles so both of v7x's
    # TensorCores get work along the "parallel" batch axis.
    n_target = max(2, pl.cdiv(B, 2048))
    return min(2048, _round_up(pl.cdiv(B, n_target), 512))


def simple_net_forward(x, w1, b1, w2, b2, *, use_bf16=True):
    """x: (B, 401); w1: (401, 128); b1: (128,); w2: (128, 1); b2: (1,)."""
    B, f_in = x.shape
    assert f_in == F_IN
    # w2.reshape(1, HID) below is a valid transpose only because F_OUT == 1.
    assert w2.shape == (HID, F_OUT) and F_OUT == 1

    compute_dtype = jnp.bfloat16 if use_bf16 else jnp.float32

    TB = _pick_tile(B)
    n_tiles = pl.cdiv(B, TB)

    # One-time (tiny) layout prep on the resident operands only; x goes in raw.
    w1_c = w1.astype(compute_dtype)                    # (401, 128)
    b1_2d = b1.reshape(1, HID).astype(jnp.float32)     # (1, 128)
    w2_row = w2.reshape(1, HID).astype(jnp.float32)    # (128,1) column -> (1,128) row
    b2_2d = b2.reshape(1, F_OUT).astype(jnp.float32)   # (1, 1)

    out = pl.pallas_call(
        _make_kernel(compute_dtype),
        out_shape=jax.ShapeDtypeStruct((B, F_OUT), jnp.float32),
        grid=(n_tiles,),
        in_specs=[
            pl.BlockSpec((TB, F_IN), lambda i: (i, 0)),    # x tile (pipelined, raw f32)
            pl.BlockSpec((F_IN, HID), lambda i: (0, 0)),   # w1 (VMEM-resident)
            pl.BlockSpec((1, HID), lambda i: (0, 0)),      # b1 (resident)
            pl.BlockSpec((1, HID), lambda i: (0, 0)),      # w2 row (resident)
            pl.BlockSpec((1, F_OUT), lambda i: (0, 0)),    # b2 (resident)
        ],
        out_specs=pl.BlockSpec((TB, F_OUT), lambda i: (i, 0)),
        compiler_params=pltpu.CompilerParams(
            dimension_semantics=("parallel",)),
    )(x, w1_c, b1_2d, w2_row, b2_2d)

    return out


def init_params(key):
    # Mimics PyTorch nn.Linear default init: U(-1/sqrt(fan_in), 1/sqrt(fan_in)).
    k1, k2, k3, k4 = jax.random.split(key, 4)
    bound1 = 1.0 / jnp.sqrt(F_IN)
    bound2 = 1.0 / jnp.sqrt(HID)
    w1 = jax.random.uniform(k1, (F_IN, HID), jnp.float32, -bound1, bound1)
    b1 = jax.random.uniform(k2, (HID,), jnp.float32, -bound1, bound1)
    w2 = jax.random.uniform(k3, (HID, F_OUT), jnp.float32, -bound2, bound2)
    b2 = jax.random.uniform(k4, (F_OUT,), jnp.float32, -bound2, bound2)
    return w1, b1, w2, b2


if __name__ == "__main__":
    key = jax.random.PRNGKey(0)
    kx, kp = jax.random.split(key)
    w1, b1, w2, b2 = init_params(kp)

    # --- small-batch path (B=8, single 8-row tile) ---
    B = 8
    x = jax.random.normal(kx, (B, F_IN), jnp.float32)
    ref = jnp.maximum(x @ w1 + b1, 0.0) @ w2 + b2

    out_f32 = simple_net_forward(x, w1, b1, w2, b2, use_bf16=False)
    jax.block_until_ready(out_f32)
    assert out_f32.shape == (B, F_OUT)
    assert jnp.allclose(out_f32, ref, atol=1e-4, rtol=1e-4)

    out_bf16 = simple_net_forward(x, w1, b1, w2, b2, use_bf16=True)
    jax.block_until_ready(out_bf16)
    assert out_bf16.shape == (B, F_OUT)
    assert jnp.allclose(out_bf16, ref, atol=2e-2, rtol=2e-2)

    # --- multi-tile path: exercises grid=cdiv(B,TB), the masked partial final
    #     block of the no-batch-pad layout, and two-tile megacore sharding. ---
    B2 = 1300
    x2 = jax.random.normal(kx, (B2, F_IN), jnp.float32)
    ref2 = jnp.maximum(x2 @ w1 + b1, 0.0) @ w2 + b2
    out2 = simple_net_forward(x2, w1, b1, w2, b2, use_bf16=False)
    jax.block_until_ready(out2)
    assert out2.shape == (B2, F_OUT)
    assert jnp.allclose(out2, ref2, atol=1e-4, rtol=1e-4)

    print("KERNEL_OK")
</pallas_src>

<mosaic_0001>
module attributes {stable_mosaic.version = 11 : i64} {
  func.func @mlp_kernel(%arg0: i32, %arg1: memref<8x401xf32, #tpu.memory_space<vmem>>, %arg2: memref<401x128xf32, #tpu.memory_space<vmem>>, %arg3: memref<1x128xf32, #tpu.memory_space<vmem>>, %arg4: memref<1x128xf32, #tpu.memory_space<vmem>>, %arg5: memref<1x1xf32, #tpu.memory_space<vmem>>, %arg6: memref<8x1xf32, #tpu.memory_space<vmem>>) attributes {dimension_semantics = [#tpu.dimension_semantics<parallel>], iteration_bounds = array<i64: 1>, scalar_prefetch = 0 : i64, scratch_operands = 0 : i64, tpu.core_type = #tpu.core_type<tc>, window_params = [{transform_indices = @transform_0, window_bounds = array<i64: 8, 401>}, {pipeline_mode = #tpu.pipeline_mode<synchronous>, transform_indices = @transform_1, window_bounds = array<i64: 401, 128>}, {pipeline_mode = #tpu.pipeline_mode<synchronous>, transform_indices = @transform_2, window_bounds = array<i64: 1, 128>}, {pipeline_mode = #tpu.pipeline_mode<synchronous>, transform_indices = @transform_3, window_bounds = array<i64: 1, 128>}, {pipeline_mode = #tpu.pipeline_mode<synchronous>, transform_indices = @transform_4, window_bounds = array<i64: 1, 1>}, {transform_indices = @transform_5, window_bounds = array<i64: 8, 1>}]} {
    %c0 = arith.constant 0 : index
    %c0_0 = arith.constant 0 : index
    %0 = vector.load %arg1[%c0, %c0_0] : memref<8x401xf32, #tpu.memory_space<vmem>>, vector<8x401xf32>
    %c0_1 = arith.constant 0 : index
    %c0_2 = arith.constant 0 : index
    %1 = vector.load %arg2[%c0_1, %c0_2] : memref<401x128xf32, #tpu.memory_space<vmem>>, vector<401x128xf32>
    %cst = arith.constant dense<0.000000e+00> : vector<8x128xf32>
    %2 = tpu.matmul %0, %1, %cst {dimension_numbers = #tpu.dot_dimension_numbers<[1], [0], [0], [1], [0, 0, 1, 1], [], []>} : vector<8x401xf32>, vector<401x128xf32>, vector<8x128xf32> -> vector<8x128xf32>
    %c0_3 = arith.constant 0 : index
    %c0_4 = arith.constant 0 : index
    %3 = vector.load %arg3[%c0_3, %c0_4] : memref<1x128xf32, #tpu.memory_space<vmem>>, vector<1x128xf32>
    %4 = vector.broadcast %3 : vector<1x128xf32> to vector<8x128xf32>
    %5 = arith.addf %2, %4 : vector<8x128xf32>
    %cst_5 = arith.constant 0.000000e+00 : f32
    %6 = vector.broadcast %cst_5 : f32 to vector<8x128xf32>
    %7 = arith.maximumf %5, %6 : vector<8x128xf32>
    %c0_6 = arith.constant 0 : index
    %c0_7 = arith.constant 0 : index
    %8 = vector.load %arg4[%c0_6, %c0_7] : memref<1x128xf32, #tpu.memory_space<vmem>>, vector<1x128xf32>
    %9 = vector.broadcast %8 : vector<1x128xf32> to vector<8x128xf32>
    %10 = arith.mulf %7, %9 : vector<8x128xf32>
    %cst_8 = arith.constant dense<0.000000e+00> : vector<8xf32>
    %11 = vector.multi_reduction <add>, %10, %cst_8 [1] : vector<8x128xf32> to vector<8xf32>
    %12 = vector.shape_cast %11 : vector<8xf32> to vector<8x1xf32>
    %c0_9 = arith.constant 0 : index
    %c0_10 = arith.constant 0 : index
    %13 = vector.load %arg5[%c0_9, %c0_10] : memref<1x1xf32, #tpu.memory_space<vmem>>, vector<1x1xf32>
    %14 = vector.broadcast %13 : vector<1x1xf32> to vector<8x1xf32>
    %15 = arith.addf %12, %14 : vector<8x1xf32>
    %c0_11 = arith.constant 0 : index
    %c0_12 = arith.constant 0 : index
    %16 = vector.load %arg6[%c0_11, %c0_12] : memref<8x1xf32, #tpu.memory_space<vmem>>, vector<8x1xf32>
    tpu.vector_store %arg6[%c0_11, %c0_12], %15 {strides = array<i32>} : memref<8x1xf32, #tpu.memory_space<vmem>>, vector<8x1xf32>,
    return
  }
  func.func @transform_0(%arg0: i32) -> (i32, i32) {
    %c0_i32 = arith.constant 0 : i32
    %c0_i32_0 = arith.constant 0 : i32
    return %arg0, %c0_i32 : i32, i32
  }
  func.func @transform_1(%arg0: i32) -> (i32, i32) {
    %c0_i32 = arith.constant 0 : i32
    %c0_i32_0 = arith.constant 0 : i32
    %c0_i32_1 = arith.constant 0 : i32
    return %c0_i32, %c0_i32_0 : i32, i32
  }
  func.func @transform_2(%arg0: i32) -> (i32, i32) {
    %c0_i32 = arith.constant 0 : i32
    %c0_i32_0 = arith.constant 0 : i32
    %c0_i32_1 = arith.constant 0 : i32
    return %c0_i32, %c0_i32_0 : i32, i32
  }
  func.func @transform_3(%arg0: i32) -> (i32, i32) {
    %c0_i32 = arith.constant 0 : i32
    %c0_i32_0 = arith.constant 0 : i32
    %c0_i32_1 = arith.constant 0 : i32
    return %c0_i32, %c0_i32_0 : i32, i32
  }
  func.func @transform_4(%arg0: i32) -> (i32, i32) {
    %c0_i32 = arith.constant 0 : i32
    %c0_i32_0 = arith.constant 0 : i32
    %c0_i32_1 = arith.constant 0 : i32
    return %c0_i32, %c0_i32_0 : i32, i32
  }
  func.func @transform_5(%arg0: i32) -> (i32, i32) {
    %c0_i32 = arith.constant 0 : i32
    %c0_i32_0 = arith.constant 0 : i32
    return %arg0, %c0_i32 : i32, i32
  }
}

</mosaic_0001>

<bundles_post_ra>
// kernel: tpu_custom_call.1
= control target key start
LH: loop header
LB: loop body
LE: loop exit
PB: predicated region body
PF: predicated region fallthrough
CT: control target
= control target key end

     0   :  { %s527_s0 = inlined_call_operand.hbm [shape: f32[8,401], index: 0, kind: input, shape index: {}]   ;;  %s528_s1 = inlined_call_operand.hbm [shape: f32[401,128], index: 1, kind: input, shape index: {}]   ;;  %s529_s2 = inlined_call_operand.vmem [shape: f32[1,128], index: 2, kind: input, shape index: {}]   ;;  %s530_s3 = inlined_call_operand.vmem [shape: f32[1,128], index: 3, kind: input, shape index: {}]   ;;  %s531_s4 = inlined_call_operand.<no memory space> [shape: f32[1,1], index: 4, kind: input, shape index: {}]   ;;  %s532_s5 = inlined_call_operand.vmem [shape: f32[8,1], index: 5, kind: output, shape index: {}]  }
   0x1   :  { %v10_v0 = vstv %s531_s4 }
   0x2   :  { %11 = vst [vmem:[#allocation2] sm:$0x1] %v10_v0 }
   0x3   :  { %12 = vsyncpa [#allocation4], 0 }
   0x4   :  { %13 = vsyncpa [#allocation6], 0  ;;  %s438_s20 = smov [#allocation3]   ;;  %s439_s22 = smov [#allocation5]  }
   0x5   :  { %s20_s21 = sshll.u32 %s438_s20, 4  ;;  %s29_s23 = sshll.u32 %s439_s22, 4  ;;  %s21_s21 = int_to_ptr.vmem [resolvable:$true] %s20_s21  ;;  %s477_s23 = int_to_ptr.vmem [resolvable:$true] %s29_s23 }
   0x6   :  { %s390_s26 = scalar_lea.hbm %s527_s0, 512 }
   0x7   :  { %p391_p0 = scmp.ne.s32.totalorder %s527_s0, %s390_s26  ;;  %p394_p1 = scmp.lt.u32.totalorder %s390_s26, %s527_s0 }
   0x9   :  { %p396_p2 = pnand %p394_p1, %p391_p0 }
   0xb   :  { %399 = shalt.err (!%p396_p2)
}
   0xc   :  { %s400_s30 = scalar_lea.vmem %s21_s21, 512  ;;  %p405_p4 = scmp.lt.s32.totalorder %s21_s21, %s21_s21 }
   0xd   :  { %p401_p3 = scmp.ne.s32.totalorder %s21_s21, %s400_s30  ;;  %p406_p5 = scmp.lt.s32.totalorder %s400_s30, %s400_s30 }
   0xf   :  { %p407_p6 = por %p406_p5, %p405_p4 }
  0x11   :  { %p408_p7 = pnand %p407_p6, %p401_p3 }
  0x13   :  { %411 = shalt.err (!%p408_p7)
}
  0x14   :  { %23 = dma.hbm_to_vmem [thread:$0]  %s527_s0, 512, %s21_s21, [#allocation4]  }
  0x15   :  { %s412_s10 = scalar_lea.hbm %s528_s1, 6528 }
  0x16   :  { %p413_p8 = scmp.ne.s32.totalorder %s528_s1, %s412_s10  ;;  %p416_p9 = scmp.lt.u32.totalorder %s412_s10, %s528_s1 }
  0x18   :  { %p418_p10 = pnand %p416_p9, %p413_p8 }
  0x1a   :  { %421 = shalt.err (!%p418_p10)
}
  0x1b   :  { %s422_s15 = scalar_lea.vmem %s477_s23, 6528  ;;  %p427_p12 = scmp.lt.s32.totalorder %s477_s23, %s477_s23 }
  0x1c   :  { %p423_p11 = scmp.ne.s32.totalorder %s477_s23, %s422_s15  ;;  %p428_p13 = scmp.lt.s32.totalorder %s422_s15, %s422_s15 }
  0x1e   :  { %p429_p0 = por %p428_p13, %p427_p12 }
  0x20   :  { %p430_p1 = pnand %p429_p0, %p423_p11 }
  0x22   :  { %433 = shalt.err (!%p430_p1)
}
  0x23   :  { %s440_s0 = smov 128   ;;  %s441_s16 = smov 8  }
  0x24   :  { %35 = dma.hbm_to_vmem [thread:$0]  %s528_s1, 6528, %s477_s23, [#allocation6], %s440_s0, %s440_s0, %s441_s16  }
  0x25   :  { %434 = dma.done.wait [#allocation4], 512  }
  0x26   :  { %435 = vsyncadd [#allocation4], 4294966784 }
  0x27   :  { %436 = dma.done.wait [#allocation6], 6528  }
  0x28   :  { %437 = vsyncadd [#allocation6], 4294960768  ;;  %v442_v1 = vmov 0.0|0.0   ;;  %v68_v2 = vld [vmem:[#allocation5 + $0x80] sm:$0xff]  ;;  %v69_v3 = vld [vmem:[#allocation5 + $0x88] sm:$0xff]  ;;  %vm110_vm0 = vcmask 138240  }
  0x29   :  { %357 = vmatprep.subr.bf16.mxu1 %v442_v1  ;;  %v84_v4 = vld [vmem:[#allocation5 + $0x100] sm:$0xff]  ;;  %v325_v5 = vpack.c.bf16 %v69_v3, %v68_v2  ;;  %v85_v6 = vld [vmem:[#allocation5 + $0x108] sm:$0xff]  ;;  %v70_v11 = vld [vmem:[#allocation5 + $0x90] sm:$0xff]  ;;  %vm114_vm1 = vcmask 1040384   ;;  %vm277_vm2 = vcmask 7168  }
  0x2a   :  { %v52_v7 = vld [vmem:[#allocation5] sm:$0xff]  ;;  %v53_v8 = vld [vmem:[#allocation5 + $0x8] sm:$0xff]  ;;  %v358_v9 = vpack.c.bf16 %v85_v6, %v84_v4  ;;  %v71_v12 = vld [vmem:[#allocation5 + $0x98] sm:$0xff] }
  0x2b   :  { %v327_v10 = vpack.c.bf16 %v53_v8, %v52_v7  ;;  %v86_v13 = vld [vmem:[#allocation5 + $0x110] sm:$0xff]  ;;  %326 = vmatprep.subr.bf16.mxu0 %v325_v5  ;;  %v329_v14 = vpack.c.bf16 %v71_v12, %v70_v11  ;;  %v87_v15 = vld [vmem:[#allocation5 + $0x118] sm:$0xff]  ;;  %v72_v20 = vld [vmem:[#allocation5 + $0xa0] sm:$0xff] }
  0x2c   :  { %v54_v16 = vld [vmem:[#allocation5 + $0x10] sm:$0xff]  ;;  %v55_v17 = vld [vmem:[#allocation5 + $0x18] sm:$0xff]  ;;  %359 = vmatpush1.bf16.msra.mxu1 %v358_v9  ;;  %v361_v18 = vpack.c.bf16 %v87_v15, %v86_v13  ;;  %v73_v21 = vld [vmem:[#allocation5 + $0xa8] sm:$0xff] }
  0x2d   :  { %328 = vmatpush3.bf16.msra.mxu0 %v327_v10  ;;  %v331_v19 = vpack.c.bf16 %v55_v17, %v54_v16  ;;  %v88_v22 = vld [vmem:[#allocation5 + $0x120] sm:$0xff]  ;;  %360 = vmatprep.subr.bf16.mxu1 %v442_v1  ;;  %v333_v23 = vpack.c.bf16 %v73_v21, %v72_v20  ;;  %v89_v24 = vld [vmem:[#allocation5 + $0x128] sm:$0xff]  ;;  %v74_v27 = vld [vmem:[#allocation5 + $0xb0] sm:$0xff]  ;;  %v443_v17 = vmov 0.0  }
  0x2e   :  { %330 = vmatprep.subr.bf16.mxu0 %v329_v14  ;;  %v56_v25 = vld [vmem:[#allocation5 + $0x20] sm:$0xff]  ;;  %v57_v26 = vld [vmem:[#allocation5 + $0x28] sm:$0xff]  ;;  %v75_v28 = vld [vmem:[#allocation5 + $0xb8] sm:$0xff]  ;;  %v364_v29 = vpack.c.bf16 %v89_v24, %v88_v22 }
  0x2f   :  { %v335_v30 = vpack.c.bf16 %v57_v26, %v56_v25  ;;  %v90_v31 = vld [vmem:[#allocation5 + $0x130] sm:$0xff]  ;;  %v337_v32 = vpack.c.bf16 %v75_v28, %v74_v27  ;;  %v91_v33 = vld [vmem:[#allocation5 + $0x138] sm:$0xff]  ;;  %v76_v36 = vld [vmem:[#allocation5 + $0xc0] sm:$0xff] }
  0x30   :  { %362 = vmatpush1.bf16.msra.mxu1 %v361_v18  ;;  %v58_v34 = vld [vmem:[#allocation5 + $0x30] sm:$0xff]  ;;  %v59_v35 = vld [vmem:[#allocation5 + $0x38] sm:$0xff]  ;;  %v77_v37 = vld [vmem:[#allocation5 + $0xc8] sm:$0xff]  ;;  %v367_v38 = vpack.c.bf16 %v91_v33, %v90_v31 }
  0x31   :  { %332 = vmatpush3.bf16.msra.mxu0 %v331_v19  ;;  %363 = vmatprep.subr.bf16.mxu1 %v442_v1  ;;  %v339_v39 = vpack.c.bf16 %v59_v35, %v58_v34  ;;  %v92_v40 = vld [vmem:[#allocation5 + $0x140] sm:$0xff]  ;;  %v341_v41 = vpack.c.bf16 %v77_v37, %v76_v36  ;;  %v93_v42 = vld [vmem:[#allocation5 + $0x148] sm:$0xff]  ;;  %v78_v45 = vld [vmem:[#allocation5 + $0xd0] sm:$0xff] }
  0x32   :  { %334 = vmatprep.subr.bf16.mxu0 %v333_v23  ;;  %v60_v43 = vld [vmem:[#allocation5 + $0x40] sm:$0xff]  ;;  %v61_v44 = vld [vmem:[#allocation5 + $0x48] sm:$0xff]  ;;  %v79_v46 = vld [vmem:[#allocation5 + $0xd8] sm:$0xff]  ;;  %v370_v47 = vpack.c.bf16 %v93_v42, %v92_v40 }
  0x33   :  { %v343_v48 = vpack.c.bf16 %v61_v44, %v60_v43  ;;  %v94_v49 = vld [vmem:[#allocation5 + $0x150] sm:$0xff]  ;;  %v95_v50 = vld [vmem:[#allocation5 + $0x158] sm:$0xff]  ;;  %v49_v51 = vld [vmem:[#allocation3 + $0x8] sm:$0xff]  ;;  %v345_v52 = vpack.c.bf16 %v79_v46, %v78_v45 }
  0x34   :  { %365 = vmatpush1.bf16.msra.mxu1 %v364_v29  ;;  %v62_v53 = vld [vmem:[#allocation5 + $0x50] sm:$0xff]  ;;  %v63_v54 = vld [vmem:[#allocation5 + $0x58] sm:$0xff]  ;;  %v80_v56 = vld [vmem:[#allocation5 + $0xe0] sm:$0xff]  ;;  %182 = vmatprep.mubr.f32.mxu0 %v49_v51  ;;  %v373_v58 = vpack.c.bf16 %v95_v50, %v94_v49 }
  0x35   :  { %336 = vmatpush3.bf16.msra.mxu0 %v335_v30  ;;  %366 = vmatprep.subr.bf16.mxu1 %v442_v1  ;;  %v51_v55 = vld [vmem:[#allocation3 + $0x18] sm:$0xff]  ;;  %v81_v57 = vld [vmem:[#allocation5 + $0xe8] sm:$0xff]  ;;  %v347_v59 = vpack.c.bf16 %v63_v54, %v62_v53  ;;  %v96_v60 = vld [vmem:[#allocation5 + $0x160] sm:$0xff] }
  0x36   :  { %338 = vmatprep.subr.bf16.mxu0 %v337_v32  ;;  %287 = vmatprep.mubr.msk.f32.mxu1 %vm110_vm0, %v51_v55  ;;  %v349_v61 = vpack.c.bf16 %v81_v57, %v80_v56  ;;  %v97_v62 = vld [vmem:[#allocation5 + $0x168] sm:$0xff]  ;;  %v64_v63 = vld [vmem:[#allocation5 + $0x60] sm:$0xff]  ;;  %v82_v2 = vld [vmem:[#allocation5 + $0xf0] sm:$0xff] }
  0x37   :  { %v65_v0 = vld [vmem:[#allocation5 + $0x68] sm:$0xff]  ;;  %v83_v3 = vld [vmem:[#allocation5 + $0xf8] sm:$0xff]  ;;  %v376_v4 = vpack.c.bf16 %v97_v62, %v96_v60  ;;  %v98_v6 = vld [vmem:[#allocation5 + $0x170] sm:$0xff] }
  0x38   :  { %368 = vmatpush1.bf16.msra.mxu1 %v367_v38  ;;  %v351_v5 = vpack.c.bf16 %v65_v0, %v64_v63  ;;  %v353_v7 = vpack.c.bf16 %v83_v3, %v82_v2  ;;  %v99_v8 = vld [vmem:[#allocation5 + $0x178] sm:$0xff]  ;;  %v66_v9 = vld [vmem:[#allocation5 + $0x70] sm:$0xff]  ;;  %v100_v13 = vld [vmem:[#allocation5 + $0x180] sm:$0xff] }
  0x39   :  { %340 = vmatpush3.bf16.msra.mxu0 %v339_v39  ;;  %369 = vmatprep.subr.bf16.mxu1 %v442_v1  ;;  %v67_v10 = vld [vmem:[#allocation5 + $0x78] sm:$0xff]  ;;  %v379_v11 = vpack.c.bf16 %v99_v8, %v98_v6  ;;  %v101_v14 = vld [vmem:[#allocation5 + $0x188] sm:$0xff]  ;;  %v48_v15 = vld [vmem:[#allocation3] sm:$0xff] }
  0x3a   :  { %342 = vmatprep.subr.bf16.mxu0 %v341_v41  ;;  %v355_v12 = vpack.c.bf16 %v67_v10, %v66_v9  ;;  %v382_v16 = vpack.c.bf16 %v101_v14, %v100_v13  ;;  %v102_v18 = vld [vmem:[#allocation5 + $0x190] sm:$0x1]  ;;  %v285_v22 = vld [vmem:[%s529_s2] ss:$0 sm:$0xff] }
  0x3b   :  { %v50_v19 = vld [vmem:[#allocation3 + $0x10] sm:$0xff]  ;;  %v288_v27 = vld [vmem:[%s530_s3] ss:$0 sm:$0xff] }
  0x3c   :  { %371 = vmatpush1.bf16.msra.mxu1 %v370_v47  ;;  %v289_v30 = vld [vmem:[#allocation2] ss:$0 sm:$0xff] }
  0x3d   :  { %344 = vmatpush3.bf16.msra.mxu0 %v343_v48  ;;  %372 = vmatprep.subr.bf16.mxu1 %v442_v1 }
  0x3e   :  { %346 = vmatprep.subr.bf16.mxu0 %v345_v52 }
  0x40   :  { %374 = vmatpush1.bf16.msra.mxu1 %v373_v58 }
  0x41   :  { %348 = vmatpush3.bf16.msra.mxu0 %v347_v59  ;;  %375 = vmatprep.subr.bf16.mxu1 %v442_v1 }
  0x42   :  { %350 = vmatprep.subr.bf16.mxu0 %v349_v61 }
  0x44   :  { %377 = vmatpush1.bf16.msra.mxu1 %v376_v4 }
  0x45   :  { %352 = vmatpush3.bf16.msra.mxu0 %v351_v5  ;;  %378 = vmatprep.subr.bf16.mxu1 %v442_v1 }
  0x46   :  { %354 = vmatprep.subr.bf16.mxu0 %v353_v7 }
  0x48   :  { %380 = vmatpush1.bf16.msra.mxu1 %v379_v11 }
  0x49   :  { %356 = vmatpush3.bf16.msra.mxu0 %v355_v12  ;;  %381 = vmatprep.subr.bf16.mxu1 %v442_v1 }
  0x4c   :  { %183 = vmatmul.mubr.f32.vlgmr.msra.gmra.mrb[0].mxu0 %v48_v15  ;;  %383 = vmatpush1.bf16.msra.mxu1 %v382_v16 }
  0x4d   :  { %224 = vmatprep.subr.mxu1 %v443_v17 }
  0x50   :  { %286 = vmatpush1.msk.msra.mxu1 %vm114_vm1, %v102_v18 }
  0x51   :  { %253 = vmatmul.mubr.f32.vlgmr.msra.gmra.mrb[0].mxu1 %v50_v19 }
 0x11f   :  { %v322_v20 = vpop.f32.mrb[0].mxu0 }
 0x120   :  { %v323_v21 = vpop.f32.mrb[1].mxu0 }
 0x121   :  { %v324_v23 = vadd.f32 %v323_v21, %v322_v20 }
 0x123   :  { %v185_v24 = vadd.f32 %v324_v23, %v285_v22 }
 0x124   :  { %v254_v25 = vpop.f32.mrb[0].mxu1 }
 0x125   :  { %v255_v26 = vadd.f32 %v254_v25, %v185_v24  ;;  %v256_v1 = vpop.f32.mrb[1].mxu1 }
 0x127   :  { %v258_v28 = vmax.f32 %v255_v26, 0.0 }
 0x129   :  { %v266_v29 = vmul.f32 %v288_v27, %v258_v28 }
 0x12b   :  { %267 = vadd.xlane.f32.xlu0 %v266_v29 }
 0x1b8   :  { %v268_v31 = vpop.xlane.xlu0 %267 }
 0x1b9   :  { %v276_v32 = vadd.f32 %v289_v30, %v268_v31 }
 0x1bb   :  { %278 = vst.msk [vmem:[%s532_s5] sm:$0xff] %vm277_vm2, %v276_v32 }
 0x1bc   :  { %283 = vsyncpa [#allocation4], 1 }
 0x1bd   :  { %284 = vsyncpa [#allocation6], 1 }

</bundles_post_ra>
